<compile_context>
chip_gen: v7x
topology: tpu7x:2x2x1
jax: 0.10.0
libtpu: 0.0.40
codegen_flags: <defaults>
</compile_context>

<pallas_src>
import jax
import jax.numpy as jnp
from jax.experimental import pallas as pl
from jax.experimental.pallas import tpu as pltpu

EPS = 1e-12


def fused_kernel(x_ref, y_ref, w_ref, b_ref, o_ref):
    # x_ref, y_ref: (tm, H)   w_ref: (H, H) effective weight (in, out)
    # b_ref: (1, H) effective bias
    s = x_ref[...] + y_ref[...]                                   # add
    h = s.shape[-1]
    inv_h = 1.0 / h
    # Both reductions computed from s (back-to-back XLU), var via E[s^2]-mean^2
    sum_s = jnp.sum(s, axis=-1, keepdims=True)
    sum_s2 = jnp.sum(s * s, axis=-1, keepdims=True)
    mean = sum_s * inv_h
    var = jnp.maximum(sum_s2 * inv_h - mean * mean, 0.0)
    norm = (s - mean) * jax.lax.rsqrt(var + EPS)
    # affine folded into w_ref / b_ref; linear on the MXU, f32 accumulate
    o_ref[...] = (
        jnp.dot(norm, w_ref[...], preferred_element_type=jnp.float32)
        + b_ref[...]
    ).astype(o_ref.dtype)


def prepare_params(gamma, beta, weight, bias):
    """One-time parameter prep (outside the hot path).

    Folds the LayerNorm affine into the linear layer:
        (norm*gamma + beta) @ W^T + b
      = norm @ (gamma[:,None] * W^T) + (beta @ W^T + b)
    Returns (w_eff: (in, out), b_eff: (1, out)).
    """
    w_t = weight.T                                   # (in, out), done once
    w_eff = (gamma[:, None] * w_t).astype(weight.dtype)
    b_eff = (beta @ w_t + bias).reshape(1, -1).astype(bias.dtype)
    return w_eff, b_eff


def _pick_tm(rows):
    """Tile rows: small multi-step grid so x/y DMA pipelines against compute.

    v7x (2 TensorCores/chip): 2 balanced tiles (one per TC via 'parallel').
    v5e/v6e (1 TC/chip): 3 tiles -> double-buffering hides the tile DMA.
    """
    try:
        kind = jax.devices()[0].device_kind.lower()
    except Exception:
        kind = ""
    is_v7 = ("v7" in kind) or ("7x" in kind)
    candidates = (192, 128, 96) if is_v7 else (128, 96, 192)
    for tm in candidates:
        if rows % tm == 0 and tm % 8 == 0:
            return tm
    return rows  # fall back to a single tile


def add_layernorm_linear(x195, x191, w_eff, b_eff, *, tm=None):
    # x195, x191: [B, S, H]; w_eff: [H_in, H_out]; b_eff: [1, H_out]
    B, S, H = x195.shape
    rows = B * S
    if tm is None:
        tm = _pick_tm(rows)
    if rows % tm != 0 or tm % 8 != 0:
        tm = rows
    assert rows % tm == 0 and tm % 8 == 0 and H % 128 == 0

    x2 = x195.reshape(rows, H)
    y2 = x191.reshape(rows, H)

    cost = pl.CostEstimate(
        flops=2 * rows * H * H + 6 * rows * H,
        transcendentals=0,
        bytes_accessed=4 * (3 * rows * H + H * H + H),
    )

    out = pl.pallas_call(
        fused_kernel,
        out_shape=jax.ShapeDtypeStruct((rows, H), x195.dtype),
        grid_spec=pltpu.PrefetchScalarGridSpec(
            num_scalar_prefetch=0,
            grid=(rows // tm,),
            in_specs=[
                pl.BlockSpec((tm, H), lambda i: (i, 0)),   # x195 tile
                pl.BlockSpec((tm, H), lambda i: (i, 0)),   # x191 tile
                pl.BlockSpec((H, H), lambda i: (0, 0)),    # folded W (fetched once)
                pl.BlockSpec((1, H), lambda i: (0, 0)),    # folded bias (fetched once)
            ],
            out_specs=pl.BlockSpec((tm, H), lambda i: (i, 0)),
        ),
        compiler_params=pltpu.CompilerParams(
            dimension_semantics=("parallel",)
        ),
        cost_estimate=cost,
    )(x2, y2, w_eff, b_eff)

    return out.reshape(B, S, H)


def reference(x195, x191, gamma, beta, weight, bias):
    s = x195 + x191
    mean = jnp.mean(s, axis=-1, keepdims=True)
    var = jnp.mean((s - mean) ** 2, axis=-1, keepdims=True)
    norm = (s - mean) / jnp.sqrt(var + EPS)
    h = norm * gamma + beta
    return h @ weight.T + bias


if __name__ == "__main__":
    B, S, H = 1, 384, 256
    key = jax.random.PRNGKey(0)
    k1, k2, k3, k4, k5, k6 = jax.random.split(key, 6)

    x195 = jax.random.normal(k1, (B, S, H), dtype=jnp.float32)
    x191 = jax.random.normal(k2, (B, S, H), dtype=jnp.float32)

    # Non-trivial LayerNorm affine to exercise the gamma/beta fold.
    gamma = 1.0 + 0.1 * jax.random.normal(k5, (H,), dtype=jnp.float32)
    beta = 0.1 * jax.random.normal(k6, (H,), dtype=jnp.float32)
    bound = 1.0 / (H ** 0.5)
    weight = jax.random.uniform(k3, (H, H), minval=-bound, maxval=bound,
                                dtype=jnp.float32)
    bias = jax.random.uniform(k4, (H,), minval=-bound, maxval=bound,
                              dtype=jnp.float32)

    # One-time parameter prep (transpose + affine fold) outside the hot path.
    w_eff, b_eff = prepare_params(gamma, beta, weight, bias)
    w_eff = jax.block_until_ready(w_eff)
    b_eff = jax.block_until_ready(b_eff)

    out = add_layernorm_linear(x195, x191, w_eff, b_eff)
    out = jax.block_until_ready(out)

    ref = reference(x195, x191, gamma, beta, weight, bias)
    assert out.shape == (B, S, H)
    assert jnp.allclose(out, ref, atol=1e-4, rtol=1e-4)

    print("KERNEL_OK")
</pallas_src>

<mosaic_0001>
module attributes {stable_mosaic.version = 11 : i64} {
  func.func @fused_kernel(%arg0: i32, %arg1: memref<128x256xf32, #tpu.memory_space<vmem>>, %arg2: memref<128x256xf32, #tpu.memory_space<vmem>>, %arg3: memref<256x256xf32, #tpu.memory_space<vmem>>, %arg4: memref<1x256xf32, #tpu.memory_space<vmem>>, %arg5: memref<128x256xf32, #tpu.memory_space<vmem>>) attributes {dimension_semantics = [#tpu.dimension_semantics<parallel>], iteration_bounds = array<i64: 3>, scalar_prefetch = 0 : i64, scratch_operands = 0 : i64, tpu.core_type = #tpu.core_type<tc>, window_params = [{transform_indices = @transform_0, window_bounds = array<i64: 128, 256>}, {transform_indices = @transform_1, window_bounds = array<i64: 128, 256>}, {pipeline_mode = #tpu.pipeline_mode<synchronous>, transform_indices = @transform_2, window_bounds = array<i64: 256, 256>}, {pipeline_mode = #tpu.pipeline_mode<synchronous>, transform_indices = @transform_3, window_bounds = array<i64: 1, 256>}, {transform_indices = @transform_4, window_bounds = array<i64: 128, 256>}]} {
    %c0 = arith.constant 0 : index
    %c0_0 = arith.constant 0 : index
    %0 = vector.load %arg1[%c0, %c0_0] : memref<128x256xf32, #tpu.memory_space<vmem>>, vector<128x256xf32>
    %c0_1 = arith.constant 0 : index
    %c0_2 = arith.constant 0 : index
    %1 = vector.load %arg2[%c0_1, %c0_2] : memref<128x256xf32, #tpu.memory_space<vmem>>, vector<128x256xf32>
    %2 = arith.addf %0, %1 : vector<128x256xf32>
    %cst = arith.constant dense<0.000000e+00> : vector<128xf32>
    %3 = vector.multi_reduction <add>, %2, %cst [1] : vector<128x256xf32> to vector<128xf32>
    %4 = vector.shape_cast %3 : vector<128xf32> to vector<128x1xf32>
    %5 = arith.mulf %2, %2 : vector<128x256xf32>
    %cst_3 = arith.constant dense<0.000000e+00> : vector<128xf32>
    %6 = vector.multi_reduction <add>, %5, %cst_3 [1] : vector<128x256xf32> to vector<128xf32>
    %7 = vector.shape_cast %6 : vector<128xf32> to vector<128x1xf32>
    %cst_4 = arith.constant 3.906250e-03 : f32
    %8 = vector.broadcast %cst_4 : f32 to vector<128x1xf32>
    %9 = arith.mulf %4, %8 : vector<128x1xf32>
    %cst_5 = arith.constant 3.906250e-03 : f32
    %10 = vector.broadcast %cst_5 : f32 to vector<128x1xf32>
    %11 = arith.mulf %7, %10 : vector<128x1xf32>
    %12 = arith.mulf %9, %9 : vector<128x1xf32>
    %13 = arith.subf %11, %12 : vector<128x1xf32>
    %cst_6 = arith.constant 0.000000e+00 : f32
    %14 = vector.broadcast %cst_6 : f32 to vector<128x1xf32>
    %15 = arith.maximumf %13, %14 : vector<128x1xf32>
    %16 = vector.broadcast %9 : vector<128x1xf32> to vector<128x256xf32>
    %17 = arith.subf %2, %16 : vector<128x256xf32>
    %cst_7 = arith.constant 9.99999996E-13 : f32
    %18 = vector.broadcast %cst_7 : f32 to vector<128x1xf32>
    %19 = arith.addf %15, %18 : vector<128x1xf32>
    %20 = math.rsqrt %19 : vector<128x1xf32>
    %21 = vector.broadcast %20 : vector<128x1xf32> to vector<128x256xf32>
    %22 = arith.mulf %17, %21 : vector<128x256xf32>
    %c0_8 = arith.constant 0 : index
    %c0_9 = arith.constant 0 : index
    %23 = vector.load %arg3[%c0_8, %c0_9] : memref<256x256xf32, #tpu.memory_space<vmem>>, vector<256x256xf32>
    %cst_10 = arith.constant dense<0.000000e+00> : vector<128x256xf32>
    %24 = tpu.matmul %22, %23, %cst_10 {dimension_numbers = #tpu.dot_dimension_numbers<[1], [0], [0], [1], [0, 0, 1, 1], [], []>} : vector<128x256xf32>, vector<256x256xf32>, vector<128x256xf32> -> vector<128x256xf32>
    %c0_11 = arith.constant 0 : index
    %c0_12 = arith.constant 0 : index
    %25 = vector.load %arg4[%c0_11, %c0_12] : memref<1x256xf32, #tpu.memory_space<vmem>>, vector<1x256xf32>
    %26 = vector.broadcast %25 : vector<1x256xf32> to vector<128x256xf32>
    %27 = arith.addf %24, %26 : vector<128x256xf32>
    %c0_13 = arith.constant 0 : index
    %c0_14 = arith.constant 0 : index
    %28 = vector.load %arg5[%c0_13, %c0_14] : memref<128x256xf32, #tpu.memory_space<vmem>>, vector<128x256xf32>
    tpu.vector_store %arg5[%c0_13, %c0_14], %27 {strides = array<i32>} : memref<128x256xf32, #tpu.memory_space<vmem>>, vector<128x256xf32>,
    return
  }
  func.func @transform_0(%arg0: i32) -> (i32, i32) {
    %c0_i32 = arith.constant 0 : i32
    %c0_i32_0 = arith.constant 0 : i32
    return %arg0, %c0_i32 : i32, i32
  }
  func.func @transform_1(%arg0: i32) -> (i32, i32) {
    %c0_i32 = arith.constant 0 : i32
    %c0_i32_0 = arith.constant 0 : i32
    return %arg0, %c0_i32 : i32, i32
  }
  func.func @transform_2(%arg0: i32) -> (i32, i32) {
    %c0_i32 = arith.constant 0 : i32
    %c0_i32_0 = arith.constant 0 : i32
    %c0_i32_1 = arith.constant 0 : i32
    return %c0_i32, %c0_i32_0 : i32, i32
  }
  func.func @transform_3(%arg0: i32) -> (i32, i32) {
    %c0_i32 = arith.constant 0 : i32
    %c0_i32_0 = arith.constant 0 : i32
    %c0_i32_1 = arith.constant 0 : i32
    return %c0_i32, %c0_i32_0 : i32, i32
  }
  func.func @transform_4(%arg0: i32) -> (i32, i32) {
    %c0_i32 = arith.constant 0 : i32
    %c0_i32_0 = arith.constant 0 : i32
    return %arg0, %c0_i32 : i32, i32
  }
}

</mosaic_0001>

<bundles_post_ra>
// kernel: tpu_custom_call.1
= control target key start
LH: loop header
LB: loop body
LE: loop exit
PB: predicated region body
PF: predicated region fallthrough
CT: control target
= control target key end

     0   :  { %s2151_s0 = inlined_call_operand.hbm [shape: f32[384,256], index: 0, kind: input, shape index: {}]   ;;  %s2152_s1 = inlined_call_operand.hbm [shape: f32[384,256], index: 1, kind: input, shape index: {}]   ;;  %s2153_s2 = inlined_call_operand.hbm [shape: f32[256,256], index: 2, kind: input, shape index: {}]   ;;  %s2154_s3 = inlined_call_operand.vmem [shape: f32[1,256], index: 3, kind: input, shape index: {}]   ;;  %s2155_s4 = inlined_call_operand.hbm [shape: f32[384,256], index: 4, kind: output, shape index: {}]  }
   0x1   :  { %2163 = sst [smem:[#allocation14_spill]] %s2151_s0 }
   0x2   :  { %2164 = sst [smem:[#allocation15_spill]] %s2153_s2 }
   0x3   :  { %9 = vsyncpa [#allocation3], 0 }
   0x4   :  { %11 = vsyncpa [#allocation3 + $0x1], 0 }
   0x5   :  { %12 = vsyncpa [#allocation6], 0 }
   0x6   :  { %14 = vsyncpa [#allocation6 + $0x1], 0 }
   0x7   :  { %15 = vsyncpa [#allocation4], 0 }
   0x8   :  { %17 = vsyncpa [#allocation4 + $0x1], 0  ;;  %s1484_s15 = smov 0   ;;  %s1486_s16 = smov 0  }
   0x9   :  { %s1488_s17 = smov 0   ;;  %s1490_s18 = smov 0  }
   0xa LB: > { %s1505_s19 = sadd.s32 4294967295, %s1449_s18   ;;  %s1064_s20 = sadd.s32 4294967294, %s1449_s18   ;;  %s1449_s18 = sphi %s1490_s18, %s2186_s18   ;;  %s1445_s17 = sphi %s1488_s17, %s2185_s17   ;;  %s1441_s16 = sphi %s1486_s16, %s2184_s16   ;;  %s1437_s15 = sphi %s1484_s15, %s2183_s15  }
   0xb   : > { %p43_p0 = scmp.ne.s32.totalorder %s1441_s16, %s1437_s15  ;;  %p2156_p1 = scmp.eq.s32.totalorder %s1505_s19, 0 }
   0xc   : > { %p141_p3 = scmp.eq.s32.totalorder %s1064_s20, 2  ;;  %p1065_p5 = scmp.ge.s32.totalorder %s1449_s18, 1 }
   0xd   : > { %p1514_p4 = por %p2156_p1, %p43_p0  ;;  %p148_p7 = scmp.lt.s32.totalorder %s1449_s18, 4 }
   0xe   : > { %p1519_p6 = por %p141_p3, %p43_p0  ;;  %s1451_s24 = smov [#allocation7]  }
   0xf   : > { %s2165_s21 = scalar_select %p1514_p4, 1, 0 }
  0x10   : > { %s2166_s22 = scalar_select %p1519_p6, 1, 0 }
  0x11   : > { %p1524_p8 = pnand %p1065_p5, %p148_p7  ;;  %s160_s25 = sshll.u32 %s1451_s24, 4  ;;  %s161_s25 = int_to_ptr.vmem [resolvable:$true] %s160_s25 }
  0x12   : > { %s1537_s27 = sadd.s32 1, %s1449_s18   ;;  %s30_s28 = sadd.s32 1, %s1445_s17 }
  0x13   : > { %s2167_s23 = scalar_select %p1524_p8, 1, 0 }
  0x14   : > { %p1199_p9 = pneg %p1524_p8  ;;  %s27_s29 = ssub.s32 %s1449_s18, %s1537_s27 }
  0x15   : > { %s2169_s2 = sld [smem:[#allocation15_spill]] }
  0x16   : > { %p1532_p10 = pnand %p1199_p9, %p2156_p1 }
  0x18   : > { %p1289_p12 = pneg %p1532_p10 }
  0x1b   : > { %s1287_s6 = scalar_lea.hbm %s2169_s2, 8192 }
  0x1c   : > { %p1288_p11 = scmp.ne.s32.totalorder %s2169_s2, %s1287_s6  ;;  %p1294_p3 = scmp.lt.u32.totalorder %s1287_s6, %s2169_s2 }
  0x1e   : > { %p1290_p13 = pnand %p1289_p12, %p1288_p11 }
  0x20   : > { %p1291_p0 = pneg %p1290_p13 }
  0x22   : > { %p1296_p5 = pnand %p1294_p3, %p1291_p0 }
  0x24   : > { %1299 = shalt.err (!%p1296_p5)
}
  0x25   : > { %s1300_s11 = scalar_lea.vmem %s161_s25, 8192  ;;  %p1308_p2 = scmp.lt.s32.totalorder %s161_s25, %s161_s25 }
  0x26   : > { %p1301_p7 = scmp.ne.s32.totalorder %s161_s25, %s1300_s11  ;;  %p1309_p6 = scmp.lt.s32.totalorder %s1300_s11, %s1300_s11 }
  0x28   : > { %p1303_p9 = pnand %p1301_p7, %p1289_p12  ;;  %p1310_p4 = por %p1309_p6, %p1308_p2 }
  0x2a   : > { %p1304_p1 = pneg %p1303_p9 }
  0x2c   : > { %p1311_p8 = pnand %p1310_p4, %p1304_p1 }
  0x2e   : > { %1314 = shalt.err (!%p1311_p8)
}
  0x2f   : > { %s2159_s12 = smov 256   ;;  %s2161_s13 = smov 16  }
  0x30   : > { %1202 = dma.hbm_to_vmem [thread:$0]  (!%p1532_p10), %s2169_s2, 8192, %s161_s25, [#allocation6], %s2159_s12, %s2159_s12, %s2161_s13  }
  0x31   : > { %p28_p1 = scmp.eq.s32.totalorder %s27_s29, 0  ;;  %p37_p2 = scmp.ne.s32.totalorder %s1445_s17, %s1441_s16 }
  0x32   : > { %p38_p4 = scmp.eq.s32.totalorder %s1449_s18, 0  ;;  %p1215_p6 = scmp.lt.s32.totalorder %s1449_s18, 3 }
  0x33   : > { %s1566_s24 = scalar_select %p28_p1, %s1445_s17, %s30_s28  }
  0x34   : > { %p39_p8 = por %p38_p4, %p37_p2  ;;  %p2171_p11 = scmp.eq.s32.totalorder %s1505_s19, 2 }
  0x35   : > { %2170 = sst [smem:[#allocation13_spill]] %s1566_s24  ;;  %s177_s26 = sand.u32 1, %s1445_s17  }
  0x36   : > { %p1570_p12 = por %p2171_p11, %p37_p2  ;;  %s1088_s5 = sshll.u32 %s1449_s18, 12 }
  0x37   : > { %s1576_s6 = sshll.u32 %s177_s26, 8  ;;  %s2173_s0 = sld [smem:[#allocation14_spill]] }
  0x38   : > { %s181_s28 = scalar_lea.vmem [#allocation2], %s1576_s6  ;;  %p1584_p10 = pnand %p1215_p6, %p39_p8 }
  0x39   : > { %s189_s29 = sshll.u32 %s181_s28, 4  ;;  %s1593_s14 = scalar_lea.hbm %s2152_s1, %s1088_s5  ;;  %s1588_s29 = int_to_ptr.vmem [resolvable:$true] %s189_s29 }
  0x3a   : > { %s1595_s20 = scalar_lea.sflag [#allocation3], %s177_s26  ;;  %p1317_p0 = pneg %p1584_p10 }
  0x3d   : > { %s1581_s25 = scalar_lea.hbm %s2173_s0, %s1088_s5  ;;  %s1320_s12 = scalar_lea.hbm %s2173_s0, 12288 }
  0x3e   : > { %s1315_s7 = scalar_lea.hbm %s1581_s25, 4096  ;;  %p1321_p7 = scmp.lt.u32.totalorder %s1581_s25, %s2173_s0 }
  0x3f   : > { %p1316_p13 = scmp.ne.s32.totalorder %s1581_s25, %s1315_s7  ;;  %p1322_p9 = scmp.lt.u32.totalorder %s1320_s12, %s1315_s7 }
  0x40   : > { %p1324_p2 = scmp.lt.u32.totalorder %s1315_s7, %s1581_s25 }
  0x41   : > { %p1318_p3 = pnand %p1317_p0, %p1316_p13  ;;  %p1323_p1 = por %p1322_p9, %p1321_p7 }
  0x43   : > { %p1319_p5 = pneg %p1318_p3  ;;  %p1325_p4 = por %p1324_p2, %p1323_p1 }
  0x45   : > { %p1326_p6 = pnand %p1325_p4, %p1319_p5 }
  0x47   : > { %1329 = shalt.err (!%p1326_p6)
}
  0x48   : > { %s1330_s26 = scalar_lea.vmem %s1588_s29, 4096  ;;  %s1454_s5 = smov [#allocation2]  }
  0x49   : > { %p1331_p8 = scmp.ne.s32.totalorder %s1588_s29, %s1330_s26  ;;  %s1335_s10 = sshll.u32 %s1454_s5, 4  ;;  %s1336_s10 = int_to_ptr.vmem [resolvable:$false] %s1335_s10 }
  0x4a   : > { %s1337_s2 = scalar_lea.vmem %s1336_s10, 8192  ;;  %p1338_p3 = scmp.lt.s32.totalorder %s1588_s29, %s1336_s10 }
  0x4b   : > { %p1333_p11 = pnand %p1331_p8, %p1317_p0  ;;  %p1339_p7 = scmp.lt.s32.totalorder %s1337_s2, %s1330_s26 }
  0x4d   : > { %p1334_p13 = pneg %p1333_p11  ;;  %p1340_p9 = por %p1339_p7, %p1338_p3 }
  0x4f   : > { %p1341_p1 = pnand %p1340_p9, %p1334_p13 }
  0x51   : > { %1344 = shalt.err (!%p1341_p1)
}
  0x52   : > { %s2175_s12 = smov 16   ;;  %s2176_s13 = smov 256  }
  0x53   : > { %1206 = dma.hbm_to_vmem [thread:$0]  (!%p1584_p10), %s1581_s25, 4096, %s1588_s29, %s1595_s20, %s2176_s13, %s2176_s13, %s2175_s12  }
  0x54   : > { %s203_s11 = scalar_lea.vmem [#allocation5], %s1576_s6  ;;  %s199_s8 = sand.u32 1, %s1449_s18  }
  0x55   : > { %s211_s7 = sshll.u32 %s203_s11, 4  ;;  %s1630_s28 = scalar_lea.sflag [#allocation6], %s199_s8  ;;  %s1628_s7 = int_to_ptr.vmem [resolvable:$true] %s211_s7 }
  0x56   : > { %s1345_s26 = scalar_lea.hbm %s1593_s14, 4096  ;;  %s1350_s2 = scalar_lea.hbm %s2152_s1, 12288 }
  0x57   : > { %p1346_p5 = scmp.ne.s32.totalorder %s1593_s14, %s1345_s26  ;;  %p1351_p6 = scmp.lt.u32.totalorder %s1593_s14, %s2152_s1 }
  0x58   : > { %p1352_p8 = scmp.lt.u32.totalorder %s1350_s2, %s1345_s26  ;;  %p1354_p13 = scmp.lt.u32.totalorder %s1345_s26, %s1593_s14 }
  0x59   : > { %p1348_p2 = pnand %p1346_p5, %p1317_p0 }
  0x5a   : > { %p1353_p11 = por %p1352_p8, %p1351_p6 }
  0x5b   : > { %p1349_p4 = pneg %p1348_p2 }
  0x5c   : > { %p1355_p3 = por %p1354_p13, %p1353_p11 }
  0x5e   : > { %p1356_p7 = pnand %p1355_p3, %p1349_p4 }
  0x60   : > { %1359 = shalt.err (!%p1356_p7)
}
  0x61   : > { %s1360_s6 = scalar_lea.vmem %s1628_s7, 4096  ;;  %s1455_s25 = smov [#allocation5]  }
  0x62   : > { %p1361_p9 = scmp.ne.s32.totalorder %s1628_s7, %s1360_s6  ;;  %s1365_s29 = sshll.u32 %s1455_s25, 4  ;;  %s1366_s29 = int_to_ptr.vmem [resolvable:$false] %s1365_s29 }
  0x63   : > { %s1367_s0 = scalar_lea.vmem %s1366_s29, 8192  ;;  %p1368_p2 = scmp.lt.s32.totalorder %s1628_s7, %s1366_s29 }
  0x64   : > { %p1363_p1 = pnand %p1361_p9, %p1317_p0  ;;  %p1369_p6 = scmp.lt.s32.totalorder %s1367_s0, %s1360_s6 }
  0x66   : > { %p1364_p5 = pneg %p1363_p1  ;;  %p1370_p8 = por %p1369_p6, %p1368_p2 }
  0x68   : > { %p1371_p11 = pnand %p1370_p8, %p1364_p5 }
  0x6a   : > { %1374 = shalt.err (!%p1371_p11)
}
  0x6b   : > { %1209 = dma.hbm_to_vmem [thread:$0]  (!%p1584_p10), %s1593_s14, 4096, %s1628_s7, %s1630_s28, %s2176_s13, %s2176_s13, %s2175_s12  }
  0x6c   : > { %p2177_p0 = scmp.ne.s32.totalorder %s2167_s23, 0 }
  0x6d   : > { %s1662_s24 = sand.u32 (!%p2177_p0), 1, %s1441_s16   ;;  %p2178_p4 = scmp.ne.s32.totalorder (!%p2177_p0), %s2165_s21, 0 }
  0x6e   : > { %223 = sbr.rel (%p2177_p0) target bundleno = 586 (0x24a), region = 36  ;;  %s1665_s20 = sshll.u32 (!%p2177_p0), %s1662_s24, 8 }
  0x6f   : > { %s226_s9 = scalar_lea.sflag (!%p2177_p0), [#allocation3], %s1662_s24  ;;  %s1669_s11 = scalar_lea.vmem (!%p2177_p0), [#allocation2], %s1665_s20 }
  0x75   : > { %1420 = dma.done.wait (%p2178_p4), %s226_s9, 4096  }
  0x76   : > { %1422 = vsyncadd (%p2178_p4), %s226_s9, 4294963200  ;;  %s234_s23 = sand.u32 1, %s1505_s19   ;;  %s1677_s12 = scalar_lea.vmem [#allocation5], %s1665_s20 }
  0x77   : > { %s235_s14 = scalar_lea.sflag [#allocation6], %s234_s23 }
  0x78   : > { %1424 = dma.done.wait (%p2178_p4), %s235_s14, 4096  }
  0x79   : > { %1426 = vsyncadd (%p2178_p4), %s235_s14, 4294963200  ;;  %p2179_p10 = scmp.eq.s32.totalorder %s1505_s19, 0 }
  0x7b   : > { %1428 = dma.done.wait (%p2179_p10), [#allocation6], 8192   ;;  %p2180_p13 = pmov %p2179_p10 }
  0x7c   : > { %v293_v0 = vld [vmem:[%s1669_s11 + $0x90] sm:$0xff]  ;;  %v294_v1 = vld [vmem:[%s1669_s11 + $0x98] sm:$0xff]  ;;  %v275_v5 = vld [vmem:[%s1669_s11] sm:$0xff]  ;;  %s2037_s7 = scalar_lea.vmem [#allocation8], %s1665_s20  ;;  %s1092_s8 = sshll.u32 %s1505_s19, 12 }
  0x7d   : > { %1430 = vsyncadd (%p2180_p13), [#allocation6], 4294959104  ;;  %v325_v2 = vld [vmem:[%s1677_s12 + $0x90] sm:$0xff]  ;;  %v326_v3 = vld [vmem:[%s1677_s12 + $0x98] sm:$0xff]  ;;  %s959_s28 = sshll.u32 %s2037_s7, 4  ;;  %s2101_s10 = scalar_lea.hbm %s2155_s4, %s1092_s8  ;;  %s2103_s28 = int_to_ptr.vmem [resolvable:$true] %s959_s28 }
  0x7e   : > { %v1691_v4 = vadd.f32 %v325_v2, %v293_v0  ;;  %v276_v6 = vld [vmem:[%s1669_s11 + $0x8] sm:$0xff]  ;;  %v1695_v7 = vadd.f32 %v326_v3, %v294_v1  ;;  %v307_v8 = vld [vmem:[%s1677_s12] sm:$0xff]  ;;  %v277_v19 = vld [vmem:[%s1669_s11 + $0x10] sm:$0xff]  ;;  %s945_s19 = scalar_lea.sflag [#allocation4], %s1662_s24  ;;  %s1375_s2 = scalar_lea.vmem %s2103_s28, 4096 }
  0x7f   : > { %v308_v9 = vld [vmem:[%s1677_s12 + $0x8] sm:$0xff]  ;;  %v291_v10 = vld [vmem:[%s1669_s11 + $0x80] sm:$0xff]  ;;  %v1700_v11 = vadd.f32 %v307_v8, %v275_v5  ;;  %v278_v20 = vld [vmem:[%s1669_s11 + $0x18] sm:$0xff]  ;;  %p1376_p3 = scmp.ne.s32.totalorder %s2103_s28, %s1375_s2  ;;  %s1456_s6 = smov [#allocation8]  }
  0x80   : > { %v1702_v12 = vadd.f32 %v308_v9, %v276_v6  ;;  %v292_v13 = vld [vmem:[%s1669_s11 + $0x88] sm:$0xff]  ;;  %v323_v14 = vld [vmem:[%s1677_s12 + $0x80] sm:$0xff]  ;;  %v398_v16 = vadd.f32 %v1695_v7, %v1691_v4  ;;  %v309_v21 = vld [vmem:[%s1677_s12 + $0x10] sm:$0xff]  ;;  %v437_v33 = vmul.f32 %v1691_v4, %v1691_v4  ;;  %v438_v34 = vmul.f32 %v1695_v7, %v1695_v7  ;;  %s1379_s25 = sshll.u32 %s1456_s6, 4  ;;  %s1380_s25 = int_to_ptr.vmem [resolvable:$false] %s1379_s25 }
  0x81   : > { %v324_v15 = vld [vmem:[%s1677_s12 + $0x88] sm:$0xff]  ;;  %v1709_v17 = vadd.f32 %v323_v14, %v291_v10  ;;  %v419_v23 = vmul.f32 %v1700_v11, %v1700_v11  ;;  %v310_v25 = vld [vmem:[%s1677_s12 + $0x18] sm:$0xff]  ;;  %v1729_v30 = vadd.f32 %v309_v21, %v277_v19  ;;  %v295_v35 = vld [vmem:[%s1669_s11 + $0xa0] sm:$0xff]  ;;  %p1377_p7 = pnand %p1376_p3, %p1570_p12  ;;  %s1381_s29 = scalar_lea.vmem %s1380_s25, 8192 }
  0x82   : > { %v1711_v18 = vadd.f32 %v324_v15, %v292_v13  ;;  %v371_v22 = vadd.f32 %v1702_v12, %v1700_v11  ;;  %v420_v24 = vmul.f32 %v1702_v12, %v1702_v12  ;;  %399 = vadd.xlane.f32.xlu1 %v398_v16  ;;  %v1731_v31 = vadd.f32 %v310_v25, %v278_v20  ;;  %v296_v36 = vld [vmem:[%s1669_s11 + $0xa8] sm:$0xff]  ;;  %v327_v40 = vld [vmem:[%s1677_s12 + $0xa0] sm:$0xff]  ;;  %v297_v52 = vld [vmem:[%s1669_s11 + $0xb0] sm:$0xff]  ;;  %p1382_p1 = scmp.lt.s32.totalorder %s2103_s28, %s1380_s25  ;;  %p1383_p5 = scmp.lt.s32.totalorder %s1381_s29, %s1375_s2 }
  0x83   : > { %v435_v26 = vmul.f32 %v1709_v17, %v1709_v17  ;;  %v421_v38 = vmul.f32 %v1729_v30, %v1729_v30  ;;  %v328_v41 = vld [vmem:[%s1677_s12 + $0xa8] sm:$0xff]  ;;  %v279_v42 = vld [vmem:[%s1669_s11 + $0x20] sm:$0xff]  ;;  %v478_v46 = vadd.f32 %v438_v34, %v437_v33  ;;  %v1751_v47 = vadd.f32 %v327_v40, %v295_v35  ;;  %v298_v56 = vld [vmem:[%s1669_s11 + $0xb8] sm:$0xff]  ;;  %p1378_p9 = pneg %p1377_p7 }
  0x84   : > { %v436_v27 = vmul.f32 %v1711_v18, %v1711_v18  ;;  %372 = vadd.xlane.f32.xlu0 %v371_v22  ;;  %v451_v28 = vadd.f32 %v420_v24, %v419_v23  ;;  %v395_v29 = vadd.f32 %v1711_v18, %v1709_v17  ;;  %v374_v37 = vadd.f32 %v1731_v31, %v1729_v30  ;;  %v280_v43 = vld [vmem:[%s1669_s11 + $0x28] sm:$0xff]  ;;  %v311_v44 = vld [vmem:[%s1677_s12 + $0x20] sm:$0xff]  ;;  %v329_v57 = vld [vmem:[%s1677_s12 + $0xb0] sm:$0xff]  ;;  %p1384_p2 = por %p1383_p5, %p1382_p1 }
  0x85   : > { %v422_v39 = vmul.f32 %v1731_v31, %v1731_v31  ;;  %v312_v45 = vld [vmem:[%s1677_s12 + $0x28] sm:$0xff]  ;;  %v1753_v48 = vadd.f32 %v328_v41, %v296_v36  ;;  %v1755_v50 = vadd.f32 %v311_v44, %v279_v42  ;;  %v439_v54 = vmul.f32 %v1751_v47, %v1751_v47  ;;  %v330_v58 = vld [vmem:[%s1677_s12 + $0xb8] sm:$0xff]  ;;  %v281_v62 = vld [vmem:[%s1669_s11 + $0x30] sm:$0xff] }
  0x86   : > { %452 = vadd.xlane.f32.xlu1 %v451_v28  ;;  %v475_v32 = vadd.f32 %v436_v27, %v435_v26  ;;  %v1757_v51 = vadd.f32 %v312_v45, %v280_v43  ;;  %v282_v63 = vld [vmem:[%s1669_s11 + $0x38] sm:$0xff]  ;;  %v313_v0 = vld [vmem:[%s1677_s12 + $0x30] sm:$0xff]  ;;  %v1779_v2 = vadd.f32 %v329_v57, %v297_v52  ;;  %v1781_v3 = vadd.f32 %v330_v58, %v298_v56  ;;  %v676_v5 = vld [vmem:[#allocation7 + $0x8] sm:$0xff]  ;;  %p1385_p6 = pnand %p1384_p2, %p1378_p9 }
  0x87   : > { %v454_v49 = vadd.f32 %v422_v39, %v421_v38  ;;  %v401_v53 = vadd.f32 %v1753_v48, %v1751_v47  ;;  %v440_v55 = vmul.f32 %v1753_v48, %v1753_v48  ;;  %v423_v60 = vmul.f32 %v1755_v50, %v1755_v50  ;;  %v314_v1 = vld [vmem:[%s1677_s12 + $0x38] sm:$0xff]  ;;  %v675_v14 = vld [vmem:[#allocation7] sm:$0xff]  ;;  %v677_v15 = vld [vmem:[#allocation7 + $0x10] sm:$0xff] }
  0x88   : > { %396 = vadd.xlane.f32.xlu0 %v395_v29  ;;  %v377_v59 = vadd.f32 %v1757_v51, %v1755_v50  ;;  %v424_v61 = vmul.f32 %v1757_v51, %v1757_v51  ;;  %v678_v6 = vld [vmem:[#allocation7 + $0x18] sm:$0xff]  ;;  %v1783_v10 = vadd.f32 %v313_v0, %v281_v62  ;;  %v1785_v13 = vadd.f32 %v314_v1, %v282_v63  ;;  %v680_v19 = vld [vmem:[#allocation7 + $0x28] sm:$0xff]  ;;  %v299_v23 = vld [vmem:[%s1669_s11 + $0xc0] sm:$0xff] }
  0x89   : > { %v481_v8 = vadd.f32 %v440_v55, %v439_v54  ;;  %v1093_v16 = vpack.c.bf16 %v678_v6, %v676_v5  ;;  %v682_v20 = vld [vmem:[#allocation7 + $0x38] sm:$0xff]  ;;  %v404_v21 = vadd.f32 %v1781_v3, %v1779_v2  ;;  %v441_v22 = vmul.f32 %v1779_v2, %v1779_v2  ;;  %v679_v24 = vld [vmem:[#allocation7 + $0x20] sm:$0xff]  ;;  %v681_v25 = vld [vmem:[#allocation7 + $0x30] sm:$0xff] }
  0x8a   : > { %476 = vadd.xlane.f32.xlu1 %v475_v32  ;;  %v457_v9 = vadd.f32 %v424_v61, %v423_v60  ;;  %v442_v26 = vmul.f32 %v1781_v3, %v1781_v3  ;;  %v425_v27 = vmul.f32 %v1783_v10, %v1783_v10  ;;  %v300_v28 = vld [vmem:[%s1669_s11 + $0xc8] sm:$0xff]  ;;  %v1095_v29 = vpack.c.bf16 %v677_v15, %v675_v14  ;;  %v686_v33 = vld [vmem:[#allocation7 + $0x58] sm:$0xff]  ;;  %v331_v36 = vld [vmem:[%s1677_s12 + $0xc0] sm:$0xff] }
  0x8b   : > { %1094 = vmatprep.subr.bf16.mxu0 %v1093_v16  ;;  %v684_v32 = vld [vmem:[#allocation7 + $0x48] sm:$0xff]  ;;  %v380_v34 = vadd.f32 %v1785_v13, %v1783_v10  ;;  %v426_v35 = vmul.f32 %v1785_v13, %v1785_v13  ;;  %v283_v38 = vld [vmem:[%s1669_s11 + $0x40] sm:$0xff]  ;;  %1157 = vmatprep.subr.bf16.mxu1 %v1093_v16  ;;  %v1097_v39 = vpack.c.bf16 %v682_v20, %v680_v19  ;;  %v690_v55 = vld [vmem:[#allocation7 + $0x78] sm:$0xff] }
  0x8c   : > { %375 = vadd.xlane.f32.xlu0 %v374_v37  ;;  %v332_v37 = vld [vmem:[%s1677_s12 + $0xc8] sm:$0xff]  ;;  %v315_v41 = vld [vmem:[%s1677_s12 + $0x40] sm:$0xff]  ;;  %1096 = vmatpush1.bf16.msra.mxu0 %v1095_v29  ;;  %v1099_v43 = vpack.c.bf16 %v681_v25, %v679_v24  ;;  %v1101_v44 = vpack.c.bf16 %v686_v33, %v684_v32  ;;  %v1807_v52 = vadd.f32 %v331_v36, %v299_v23  ;;  %v301_v60 = vld [vmem:[%s1669_s11 + $0xd0] sm:$0xff] }
  0x8d   : > { %v284_v40 = vld [vmem:[%s1669_s11 + $0x48] sm:$0xff]  ;;  %1173 = vmatpush1.bf16.msra.mxu1 %v1095_v29  ;;  %1098 = vmatprep.subr.bf16.mxu0 %v1097_v39  ;;  %v683_v45 = vld [vmem:[#allocation7 + $0x40] sm:$0xff]  ;;  %v460_v56 = vadd.f32 %v426_v35, %v425_v27  ;;  %v1811_v57 = vadd.f32 %v315_v41, %v283_v38  ;;  %v689_v63 = vld [vmem:[#allocation7 + $0x70] sm:$0xff] }
  0x8e   : > { %479 = vadd.xlane.f32.xlu1 %v478_v46  ;;  %v316_v42 = vld [vmem:[%s1677_s12 + $0x48] sm:$0xff]  ;;  %1158 = vmatprep.subr.bf16.mxu1 %v1097_v39  ;;  %v685_v46 = vld [vmem:[#allocation7 + $0x50] sm:$0xff]  ;;  %v687_v62 = vld [vmem:[#allocation7 + $0x60] sm:$0xff]  ;;  %v443_v1 = vmul.f32 %v1807_v52, %v1807_v52 }
  0x8f   : > { %v688_v54 = vld [vmem:[#allocation7 + $0x68] sm:$0xff]  ;;  %v1813_v58 = vadd.f32 %v316_v42, %v284_v40  ;;  %v302_v6 = vld [vmem:[%s1669_s11 + $0xd8] sm:$0xff]  ;;  %v427_v15 = vmul.f32 %v1811_v57, %v1811_v57  ;;  %v333_v19 = vld [vmem:[%s1677_s12 + $0xd0] sm:$0xff]  ;;  %v1107_v25 = vpack.c.bf16 %v689_v63, %v687_v62 }
  0x90   : > { %455 = vadd.xlane.f32.xlu0 %v454_v49  ;;  %v484_v49 = vadd.f32 %v442_v26, %v441_v22  ;;  %1100 = vmatpush1.bf16.msra.mxu0 %v1099_v43  ;;  %v1105_v61 = vpack.c.bf16 %v690_v55, %v688_v54  ;;  %v334_v20 = vld [vmem:[%s1677_s12 + $0xd8] sm:$0xff]  ;;  %v317_v23 = vld [vmem:[%s1677_s12 + $0x50] sm:$0xff]  ;;  %v691_v27 = vld [vmem:[#allocation7 + $0x80] sm:$0xff]  ;;  %v1835_v32 = vadd.f32 %v333_v19, %v301_v60 }
  0x91   : > { %1174 = vmatpush1.bf16.msra.mxu1 %v1099_v43  ;;  %1102 = vmatprep.subr.bf16.mxu0 %v1101_v44  ;;  %v383_v14 = vadd.f32 %v1813_v58, %v1811_v57  ;;  %v428_v16 = vmul.f32 %v1813_v58, %v1813_v58  ;;  %v286_v22 = vld [vmem:[%s1669_s11 + $0x58] sm:$0xff]  ;;  %v1837_v33 = vadd.f32 %v334_v20, %v302_v6  ;;  %v303_v40 = vld [vmem:[%s1669_s11 + $0xe0] sm:$0xff]  ;;  %v697_v43 = vld [vmem:[#allocation7 + $0xb0] sm:$0xff] }
  0x92   : > { %402 = vadd.xlane.f32.xlu1 %v401_v53  ;;  %v1809_v53 = vadd.f32 %v332_v37, %v300_v28  ;;  %1159 = vmatprep.subr.bf16.mxu1 %v1101_v44  ;;  %v318_v24 = vld [vmem:[%s1677_s12 + $0x58] sm:$0xff]  ;;  %v693_v28 = vld [vmem:[#allocation7 + $0x90] sm:$0xff]  ;;  %v695_v42 = vld [vmem:[#allocation7 + $0xa0] sm:$0xff] }
  0x93   : > { %v698_v35 = vld [vmem:[#allocation7 + $0xb8] sm:$0xff]  ;;  %v463_v36 = vadd.f32 %v428_v16, %v427_v15  ;;  %v1841_v38 = vadd.f32 %v318_v24, %v286_v22  ;;  %v1111_v39 = vpack.c.bf16 %v693_v28, %v691_v27  ;;  %v410_v44 = vadd.f32 %v1837_v33, %v1835_v32  ;;  %v700_v54 = vld [vmem:[#allocation7 + $0xc8] sm:$0xff]  ;;  %v287_v63 = vld [vmem:[%s1669_s11 + $0x60] sm:$0xff] }
  0x94   : > { %378 = vadd.xlane.f32.xlu0 %v377_v59  ;;  %v1103_v59 = vpack.c.bf16 %v685_v46, %v683_v45  ;;  %v407_v0 = vadd.f32 %v1809_v53, %v1807_v52  ;;  %v444_v5 = vmul.f32 %v1809_v53, %v1809_v53  ;;  %v445_v45 = vmul.f32 %v1835_v32, %v1835_v32  ;;  %v702_v55 = vld [vmem:[#allocation7 + $0xd8] sm:$0xff]  ;;  %v336_v62 = vld [vmem:[%s1677_s12 + $0xe8] sm:$0xff]  ;;  %v703_v28 = vld [vmem:[#allocation7 + $0xe0] sm:$0xff] }
  0x95   : > { %v446_v46 = vmul.f32 %v1837_v33, %v1837_v33  ;;  %v430_v60 = vmul.f32 %v1841_v38, %v1841_v38  ;;  %v1115_v6 = vpack.c.bf16 %v697_v43, %v695_v42  ;;  %v704_v20 = vld [vmem:[#allocation7 + $0xe8] sm:$0xff] }
  0x96   : > { %482 = vadd.xlane.f32.xlu1 %v481_v8  ;;  %v692_v8 = vld [vmem:[#allocation7 + $0x88] sm:$0xff]  ;;  %1104 = vmatpush1.bf16.msra.mxu0 %v1103_v59  ;;  %v487_v29 = vadd.f32 %v444_v5, %v443_v1  ;;  %v319_v1 = vld [vmem:[%s1677_s12 + $0x60] sm:$0xff] }
  0x97   : > { %1175 = vmatpush1.bf16.msra.mxu1 %v1103_v59  ;;  %1106 = vmatprep.subr.bf16.mxu0 %v1105_v61  ;;  %v320_v5 = vld [vmem:[%s1677_s12 + $0x68] sm:$0xff]  ;;  %v490_v15 = vadd.f32 %v446_v46, %v445_v45  ;;  %v337_v45 = vld [vmem:[%s1677_s12 + $0xf0] sm:$0xff]  ;;  %v338_v46 = vld [vmem:[%s1677_s12 + $0xf8] sm:$0xff] }
  0x98   : > { %458 = vadd.xlane.f32.xlu0 %v457_v9  ;;  %v694_v9 = vld [vmem:[#allocation7 + $0x98] sm:$0xff]  ;;  %1160 = vmatprep.subr.bf16.mxu1 %v1105_v61  ;;  %v335_v61 = vld [vmem:[%s1677_s12 + $0xe0] sm:$0xff] }
  0x99   : > { %v1109_v26 = vpack.c.bf16 %v694_v9, %v692_v8  ;;  %v1117_v8 = vpack.c.bf16 %v702_v55, %v700_v54  ;;  %v699_v9 = vld [vmem:[#allocation7 + $0xc0] sm:$0xff]  ;;  %v1863_v16 = vadd.f32 %v335_v61, %v303_v40  ;;  %v708_v40 = vld [vmem:[#allocation7 + $0x108] sm:$0xff]  ;;  %v290_v54 = vld [vmem:[%s1669_s11 + $0x78] sm:$0xff] }
  0x9a   : > { %405 = vadd.xlane.f32.xlu1 %v404_v21  ;;  %v285_v21 = vld [vmem:[%s1669_s11 + $0x50] sm:$0xff]  ;;  %1108 = vmatpush1.bf16.msra.mxu0 %v1107_v25  ;;  %v707_v61 = vld [vmem:[#allocation7 + $0x100] sm:$0xff] }
  0x9b   : > { %v1839_v37 = vadd.f32 %v317_v23, %v285_v21  ;;  %1176 = vmatpush1.bf16.msra.mxu1 %v1107_v25  ;;  %1110 = vmatprep.subr.bf16.mxu0 %v1109_v26  ;;  %v706_v21 = vld [vmem:[#allocation7 + $0xf8] sm:$0xff]  ;;  %v1867_v23 = vadd.f32 %v319_v1, %v287_v63  ;;  %v321_v55 = vld [vmem:[%s1677_s12 + $0x70] sm:$0xff] }
  0x9c   : > { %381 = vadd.xlane.f32.xlu0 %v380_v34  ;;  %v696_v34 = vld [vmem:[#allocation7 + $0xa8] sm:$0xff]  ;;  %1161 = vmatprep.subr.bf16.mxu1 %v1109_v26  ;;  %v305_v26 = vld [vmem:[%s1669_s11 + $0xf0] sm:$0xff]  ;;  %v1121_v27 = vpack.c.bf16 %v706_v21, %v704_v20  ;;  %v711_v21 = vld [vmem:[#allocation7 + $0x120] sm:$0xff] }
  0x9d   : > { %v1113_v41 = vpack.c.bf16 %v698_v35, %v696_v34  ;;  %v429_v59 = vmul.f32 %v1839_v37, %v1839_v37  ;;  %v447_v35 = vmul.f32 %v1863_v16, %v1863_v16  ;;  %v431_v43 = vmul.f32 %v1867_v23, %v1867_v23 }
  0x9e   : > { %485 = vadd.xlane.f32.xlu1 %v484_v49  ;;  %v304_v49 = vld [vmem:[%s1669_s11 + $0xe8] sm:$0xff]  ;;  %1112 = vmatpush1.bf16.msra.mxu0 %v1111_v39 }
  0x9f   : > { %1177 = vmatpush1.bf16.msra.mxu1 %v1111_v39  ;;  %1114 = vmatprep.subr.bf16.mxu0 %v1113_v41  ;;  %v1865_v19 = vadd.f32 %v336_v62, %v304_v49  ;;  %v466_v22 = vadd.f32 %v430_v60, %v429_v59  ;;  %v306_v39 = vld [vmem:[%s1669_s11 + $0xf8] sm:$0xff]  ;;  %v289_v49 = vld [vmem:[%s1669_s11 + $0x70] sm:$0xff] }
  0xa0   : > { %461 = vadd.xlane.f32.xlu0 %v460_v56  ;;  %v386_v56 = vadd.f32 %v1841_v38, %v1839_v37  ;;  %1162 = vmatprep.subr.bf16.mxu1 %v1113_v41  ;;  %v710_v41 = vld [vmem:[#allocation7 + $0x118] sm:$0xff]  ;;  %v709_v62 = vld [vmem:[#allocation7 + $0x110] sm:$0xff]  ;;  %v1893_v1 = vadd.f32 %v338_v46, %v306_v39 }
  0xa1   : > { %v413_v34 = vadd.f32 %v1865_v19, %v1863_v16  ;;  %v1125_v60 = vpack.c.bf16 %v710_v41, %v708_v40  ;;  %v715_v41 = vld [vmem:[#allocation7 + $0x140] sm:$0xff] }
  0xa2   : > { %408 = vadd.xlane.f32.xlu1 %v407_v0  ;;  %v288_v0 = vld [vmem:[%s1669_s11 + $0x68] sm:$0xff]  ;;  %1116 = vmatpush1.bf16.msra.mxu0 %v1115_v6 }
  0xa3   : > { %v1869_v24 = vadd.f32 %v320_v5, %v288_v0  ;;  %1178 = vmatpush1.bf16.msra.mxu1 %v1115_v6  ;;  %1118 = vmatprep.subr.bf16.mxu0 %v1117_v8  ;;  %v1891_v0 = vadd.f32 %v337_v45, %v305_v26  ;;  %v712_v5 = vld [vmem:[#allocation7 + $0x128] sm:$0xff]  ;;  %v714_v6 = vld [vmem:[#allocation7 + $0x138] sm:$0xff] }
  0xa4   : > { %384 = vadd.xlane.f32.xlu0 %v383_v14  ;;  %v701_v14 = vld [vmem:[#allocation7 + $0xd0] sm:$0xff]  ;;  %1163 = vmatprep.subr.bf16.mxu1 %v1117_v8  ;;  %v1129_v20 = vpack.c.bf16 %v714_v6, %v712_v5  ;;  %v722_v45 = vld [vmem:[#allocation7 + $0x178] sm:$0xff]  ;;  %v728_v6 = vld [vmem:[#allocation7 + $0x1a8] sm:$0xff] }
  0xa5   : > { %v1119_v25 = vpack.c.bf16 %v701_v14, %v699_v9  ;;  %v389_v42 = vadd.f32 %v1869_v24, %v1867_v23  ;;  %v1895_v9 = vadd.f32 %v321_v55, %v289_v49  ;;  %v449_v26 = vmul.f32 %v1891_v0, %v1891_v0  ;;  %v719_v55 = vld [vmem:[#allocation7 + $0x160] sm:$0xff]  ;;  %v725_v5 = vld [vmem:[#allocation7 + $0x190] sm:$0xff] }
  0xa6   : > { %488 = vadd.xlane.f32.xlu1 %v487_v29  ;;  %v705_v29 = vld [vmem:[#allocation7 + $0xf0] sm:$0xff] }
  0xa7   : > { %1120 = vmatpush1.bf16.msra.mxu0 %v1119_v25  ;;  %1179 = vmatpush1.bf16.msra.mxu1 %v1119_v25  ;;  %v1123_v59 = vpack.c.bf16 %v705_v29, %v703_v28  ;;  %v416_v25 = vadd.f32 %v1893_v1, %v1891_v0  ;;  %v716_v28 = vld [vmem:[#allocation7 + $0x148] sm:$0xff]  ;;  %v718_v29 = vld [vmem:[#allocation7 + $0x158] sm:$0xff] }
  0xa8   : > { %464 = vadd.xlane.f32.xlu0 %v463_v36  ;;  %v448_v36 = vmul.f32 %v1865_v19, %v1865_v19  ;;  %1122 = vmatprep.subr.bf16.mxu0 %v1121_v27  ;;  %v1133_v40 = vpack.c.bf16 %v718_v29, %v716_v28  ;;  %v731_v29 = vld [vmem:[#allocation7 + $0x1c0] sm:$0xff] }
  0xa9   : > { %1164 = vmatprep.subr.bf16.mxu1 %v1121_v27  ;;  %v450_v27 = vmul.f32 %v1893_v1, %v1893_v1 }
  0xaa   : > { %411 = vadd.xlane.f32.xlu1 %v410_v44  ;;  %v432_v44 = vmul.f32 %v1869_v24, %v1869_v24  ;;  %v493_v63 = vadd.f32 %v448_v36, %v447_v35  ;;  %v433_v35 = vmul.f32 %v1895_v9, %v1895_v9 }
  0xab   : > { %1124 = vmatpush1.bf16.msra.mxu0 %v1123_v59  ;;  %1180 = vmatpush1.bf16.msra.mxu1 %v1123_v59  ;;  %v724_v59 = vld [vmem:[#allocation7 + $0x188] sm:$0xff] }
  0xac   : > { %387 = vadd.xlane.f32.xlu0 %v386_v56  ;;  %v322_v56 = vld [vmem:[%s1677_s12 + $0x78] sm:$0xff]  ;;  %v469_v8 = vadd.f32 %v432_v44, %v431_v43  ;;  %1126 = vmatprep.subr.bf16.mxu0 %v1125_v60  ;;  %v496_v43 = vadd.f32 %v450_v27, %v449_v26  ;;  %v720_v44 = vld [vmem:[#allocation7 + $0x168] sm:$0xff] }
  0xad   : > { %v1897_v14 = vadd.f32 %v322_v56, %v290_v54  ;;  %1165 = vmatprep.subr.bf16.mxu1 %v1125_v60  ;;  %v1137_v54 = vpack.c.bf16 %v722_v45, %v720_v44  ;;  %v721_v56 = vld [vmem:[#allocation7 + $0x170] sm:$0xff]  ;;  %v726_v60 = vld [vmem:[#allocation7 + $0x198] sm:$0xff] }
  0xae   : > { %491 = vadd.xlane.f32.xlu1 %v490_v15  ;;  %v1127_v15 = vpack.c.bf16 %v709_v62, %v707_v61  ;;  %v1139_v61 = vpack.c.bf16 %v721_v56, %v719_v55  ;;  %v1141_v62 = vpack.c.bf16 %v726_v60, %v724_v59  ;;  %v734_v26 = vld [vmem:[#allocation7 + $0x1d8] sm:$0xff] }
  0xaf   : > { %v434_v36 = vmul.f32 %v1897_v14, %v1897_v14 }
  0xb0   : > { %467 = vadd.xlane.f32.xlu0 %v466_v22  ;;  %v713_v22 = vld [vmem:[#allocation7 + $0x130] sm:$0xff]  ;;  %1128 = vmatpush1.bf16.msra.mxu0 %v1127_v15 }
  0xb1   : > { %1181 = vmatpush1.bf16.msra.mxu1 %v1127_v15  ;;  %v1131_v39 = vpack.c.bf16 %v713_v22, %v711_v21  ;;  %1130 = vmatprep.subr.bf16.mxu0 %v1129_v20  ;;  %v472_v46 = vadd.f32 %v434_v36, %v433_v35  ;;  %v727_v21 = vld [vmem:[#allocation7 + $0x1a0] sm:$0xff]  ;;  %v729_v22 = vld [vmem:[#allocation7 + $0x1b0] sm:$0xff]  ;;  %v736_v35 = vld [vmem:[#allocation7 + $0x1e8] sm:$0xff] }
  0xb2   : > { %414 = vadd.xlane.f32.xlu1 %v413_v34  ;;  %v392_v34 = vadd.f32 %v1897_v14, %v1895_v9  ;;  %1166 = vmatprep.subr.bf16.mxu1 %v1129_v20  ;;  %v1147_v27 = vpack.c.bf16 %v729_v22, %v727_v21  ;;  %v738_v36 = vld [vmem:[#allocation7 + $0x1f8] sm:$0xff] }
  0xb4   : > { %390 = vadd.xlane.f32.xlu0 %v389_v42  ;;  %v717_v42 = vld [vmem:[#allocation7 + $0x150] sm:$0xff]  ;;  %1132 = vmatpush1.bf16.msra.mxu0 %v1131_v39 }
  0xb5   : > { %1182 = vmatpush1.bf16.msra.mxu1 %v1131_v39  ;;  %v1135_v49 = vpack.c.bf16 %v717_v42, %v715_v41  ;;  %1134 = vmatprep.subr.bf16.mxu0 %v1133_v40  ;;  %v735_v41 = vld [vmem:[#allocation7 + $0x1e0] sm:$0xff]  ;;  %v737_v42 = vld [vmem:[#allocation7 + $0x1f0] sm:$0xff] }
  0xb6   : > { %494 = vadd.xlane.f32.xlu1 %v493_v63  ;;  %1167 = vmatprep.subr.bf16.mxu1 %v1133_v40  ;;  %v723_v63 = vld [vmem:[#allocation7 + $0x180] sm:$0xff]  ;;  %v1153_v40 = vpack.c.bf16 %v738_v36, %v736_v35 }
  0xb7   : > { %v1143_v15 = vpack.c.bf16 %v725_v5, %v723_v63 }
  0xb8   : > { %470 = vadd.xlane.f32.xlu0 %v469_v8  ;;  %1136 = vmatpush1.bf16.msra.mxu0 %v1135_v49  ;;  %v730_v8 = vld [vmem:[#allocation7 + $0x1b8] sm:$0xff] }
  0xb9   : > { %1183 = vmatpush1.bf16.msra.mxu1 %v1135_v49  ;;  %1138 = vmatprep.subr.bf16.mxu0 %v1137_v54  ;;  %v1145_v20 = vpack.c.bf16 %v730_v8, %v728_v6 }
  0xba   : > { %417 = vadd.xlane.f32.xlu1 %v416_v25  ;;  %1168 = vmatprep.subr.bf16.mxu1 %v1137_v54  ;;  %v732_v25 = vld [vmem:[#allocation7 + $0x1c8] sm:$0xff] }
  0xbb   : > { %v1149_v28 = vpack.c.bf16 %v734_v26, %v732_v25 }
  0xbc   : > { %393 = vadd.xlane.f32.xlu0 %v392_v34  ;;  %1140 = vmatpush1.bf16.msra.mxu0 %v1139_v61  ;;  %v733_v34 = vld [vmem:[#allocation7 + $0x1d0] sm:$0xff] }
  0xbd   : > { %1184 = vmatpush1.bf16.msra.mxu1 %v1139_v61  ;;  %1142 = vmatprep.subr.bf16.mxu0 %v1141_v62  ;;  %v1151_v39 = vpack.c.bf16 %v733_v34, %v731_v29 }
  0xbe   : > { %497 = vadd.xlane.f32.xlu1 %v496_v43  ;;  %1169 = vmatprep.subr.bf16.mxu1 %v1141_v62  ;;  %v1155_v43 = vpack.c.bf16 %v737_v42, %v735_v41 }
  0xc0   : > { %473 = vadd.xlane.f32.xlu0 %v472_v46  ;;  %1144 = vmatpush1.bf16.msra.mxu0 %v1143_v15 }
  0xc1   : > { %1185 = vmatpush1.bf16.msra.mxu1 %v1143_v15  ;;  %1146 = vmatprep.subr.bf16.mxu0 %v1145_v20 }
  0xc2   : > { %1170 = vmatprep.subr.bf16.mxu1 %v1145_v20 }
  0xc4   : > { %1148 = vmatpush1.bf16.msra.mxu0 %v1147_v27 }
  0xc5   : > { %1186 = vmatpush1.bf16.msra.mxu1 %v1147_v27  ;;  %1150 = vmatprep.subr.bf16.mxu0 %v1149_v28 }
  0xc6   : > { %1171 = vmatprep.subr.bf16.mxu1 %v1149_v28 }
  0xc8   : > { %1152 = vmatpush1.bf16.msra.mxu0 %v1151_v39 }
  0xc9   : > { %1187 = vmatpush1.bf16.msra.mxu1 %v1151_v39  ;;  %1154 = vmatprep.subr.bf16.mxu0 %v1153_v40 }
  0xca   : > { %1172 = vmatprep.subr.bf16.mxu1 %v1153_v40 }
  0xcc   : > { %1156 = vmatpush1.bf16.msra.mxu0 %v1155_v43 }
  0xcd   : > { %1188 = vmatpush1.bf16.msra.mxu1 %v1155_v43 }
 0x10f   : > { %v400_v44 = vpop.xlane.xlu1 %399 }
 0x110   : > { %v1913_v62 = vmul.f32 0.00390625, %v400_v44 }
 0x111   : > { %v373_v45 = vpop.xlane.xlu0 %372 }
 0x112   : > { %v499_v46 = vmul.f32 0.00390625, %v373_v45  ;;  %v540_v26 = vmul.f32 %v1913_v62, %v1913_v62 }
 0x113   : > { %v453_v49 = vpop.xlane.xlu1 %452 }
 0x114   : > { %v515_v54 = vmul.f32 0.00390625, %v453_v49  ;;  %v531_v55 = vmul.f32 %v499_v46, %v499_v46 }
 0x115   : > { %v397_v56 = vpop.xlane.xlu0 %396 }
 0x116   : > { %v1911_v59 = vmul.f32 0.00390625, %v397_v56  ;;  %v547_v60 = vsub.f32 %v515_v54, %v531_v55  ;;  %v579_v56 = vsub.f32 %v1700_v11, %v499_v46 }
 0x117   : > { %v477_v61 = vpop.xlane.xlu1 %476 }
 0x118   : > { %v563_v63 = vmax.f32 %v547_v60, 0.0  ;;  %v523_v5 = vmul.f32 0.00390625, %v477_v61  ;;  %v539_v6 = vmul.f32 %v1911_v59, %v1911_v59 }
 0x119   : > { %v376_v8 = vpop.xlane.xlu0 %375 }
 0x11a   : > { %v1917_v15 = vmul.f32 0.00390625, %v376_v8  ;;  %v611_v20 = vadd.f32 1e-12, %v563_v63  ;;  %v555_v21 = vsub.f32 %v523_v5, %v539_v6  ;;  %v580_v8 = vsub.f32 %v1702_v12, %v499_v46 }
 0x11b   : > { %v480_v22 = vpop.xlane.xlu1 %479  ;;  %v596_v12 = vsub.f32 %v1711_v18, %v1911_v59  ;;  %v597_v46 = vsub.f32 %v1691_v4, %v1913_v62 }
 0x11c   : > { %1255 = vrsqrt.f32 %v611_v20  ;;  %v571_v25 = vmax.f32 %v555_v21, 0.0  ;;  %v524_v27 = vmul.f32 0.00390625, %v480_v22  ;;  %v532_v29 = vmul.f32 %v1917_v15, %v1917_v15 }
 0x11d   : > { %v456_v28 = vpop.xlane.xlu0 %455  ;;  %v581_v4 = vsub.f32 %v1729_v30, %v1917_v15 }
 0x11e   : > { %v516_v34 = vmul.f32 0.00390625, %v456_v28  ;;  %v619_v35 = vadd.f32 1e-12, %v571_v25  ;;  %v556_v36 = vsub.f32 %v524_v27, %v540_v26 }
 0x11f   : > { %v403_v40 = vpop.xlane.xlu1 %402 }
 0x120   : > { %v548_v39 = vsub.f32 %v516_v34, %v532_v29  ;;  %1257 = vrsqrt.f32 %v619_v35  ;;  %v572_v41 = vmax.f32 %v556_v36, 0.0  ;;  %v1923_v42 = vmul.f32 0.00390625, %v403_v40 }
 0x121   : > { %v379_v43 = vpop.xlane.xlu0 %378 }
 0x122   : > { %v564_v44 = vmax.f32 %v548_v39, 0.0  ;;  %v1925_v45 = vmul.f32 0.00390625, %v379_v43  ;;  %v620_v49 = vadd.f32 1e-12, %v572_v41  ;;  %v541_v60 = vmul.f32 %v1923_v42, %v1923_v42 }
 0x123   : > { %v483_v55 = vpop.xlane.xlu1 %482  ;;  %v595_v39 = vsub.f32 %v1709_v17, %v1911_v59  ;;  %v598_v17 = vsub.f32 %v1695_v7, %v1913_v62 }
 0x124   : > { %v612_v54 = vadd.f32 1e-12, %v564_v44  ;;  %1259 = vrsqrt.f32 %v620_v49  ;;  %v525_v61 = vmul.f32 0.00390625, %v483_v55  ;;  %v533_v5 = vmul.f32 %v1925_v45, %v1925_v45 }
 0x125   : > { %v459_v63 = vpop.xlane.xlu0 %458 }
 0x126   : > { %1261 = vrsqrt.f32 %v612_v54  ;;  %v517_v6 = vmul.f32 0.00390625, %v459_v63  ;;  %v1256_v20 = vpop.eup %1255  ;;  %v557_v21 = vsub.f32 %v525_v61, %v541_v60  ;;  %v582_v61 = vsub.f32 %v1731_v31, %v1917_v15 }
 0x127   : > { %v406_v25 = vpop.xlane.xlu1 %405  ;;  %v644_v26 = vmul.f32 %v1256_v20, %v580_v8  ;;  %v643_v27 = vmul.f32 %v1256_v20, %v579_v56 }
 0x128   : > { %v549_v22 = vsub.f32 %v517_v6, %v533_v5  ;;  %v573_v11 = vmax.f32 %v557_v21, 0.0  ;;  %v1933_v28 = vmul.f32 0.00390625, %v406_v25 }
 0x129   : > { %v382_v29 = vpop.xlane.xlu0 %381  ;;  %815 = vmatprep.mubr.f32.mxu0 %v644_v26 }
 0x12a   : > { %v565_v34 = vmax.f32 %v549_v22, 0.0  ;;  %v1935_v35 = vmul.f32 0.00390625, %v382_v29  ;;  %v1258_v36 = vpop.eup %1257  ;;  %v621_v40 = vadd.f32 1e-12, %v573_v11  ;;  %816 = vmatmul.mubr.f32.vlgmr.msra.gmra.mrb[0].mxu0 %v643_v27  ;;  %v542_v43 = vmul.f32 %v1933_v28, %v1933_v28 }
 0x12b   : > { %v486_v44 = vpop.xlane.xlu1 %485  ;;  %v660_v55 = vmul.f32 %v1258_v36, %v596_v12  ;;  %v659_v56 = vmul.f32 %v1258_v36, %v595_v39  ;;  %v599_v29 = vsub.f32 %v1751_v47, %v1923_v42  ;;  %v584_v47 = vsub.f32 %v1757_v51, %v1925_v45 }
 0x12c   : > { %v613_v41 = vadd.f32 1e-12, %v565_v34  ;;  %1263 = vrsqrt.f32 %v621_v40  ;;  %v526_v49 = vmul.f32 0.00390625, %v486_v44  ;;  %v534_v18 = vmul.f32 %v1935_v35, %v1935_v35 }
 0x12d   : > { %v462_v54 = vpop.xlane.xlu0 %461  ;;  %863 = vmatprep.mubr.f32.mxu1 %v660_v55  ;;  %v600_v40 = vsub.f32 %v1753_v48, %v1923_v42 }
 0x12e   : > { %1265 = vrsqrt.f32 %v613_v41  ;;  %v518_v59 = vmul.f32 0.00390625, %v462_v54  ;;  %v1260_v60 = vpop.eup %1259  ;;  %v558_v63 = vsub.f32 %v526_v49, %v542_v43  ;;  %864 = vmatmul.mubr.f32.vlgmr.msra.gmra.mrb[0].mxu1 %v659_v56  ;;  %v583_v43 = vsub.f32 %v1755_v50, %v1925_v45 }
 0x12f   : > { %v409_v8 = vpop.xlane.xlu1 %408  ;;  %v662_v20 = vmul.f32 %v1260_v60, %v598_v17  ;;  %v661_v7 = vmul.f32 %v1260_v60, %v597_v46 }
 0x130   : > { %v1262_v5 = vpop.eup %1261  ;;  %v550_v6 = vsub.f32 %v518_v59, %v534_v18  ;;  %v574_v62 = vmax.f32 %v558_v63, 0.0  ;;  %v1953_v21 = vmul.f32 0.00390625, %v409_v8  ;;  %v601_v63 = vsub.f32 %v1779_v2, %v1933_v28 }
 0x131   : > { %v385_v22 = vpop.xlane.xlu0 %384  ;;  %v646_v25 = vmul.f32 %v1262_v5, %v582_v61  ;;  %v645_v26 = vmul.f32 %v1262_v5, %v581_v4  ;;  %869 = vmatprep.mubr.f32.mxu1 %v662_v20  ;;  %v602_v20 = vsub.f32 %v1781_v3, %v1933_v28  ;;  %v586_v2 = vsub.f32 %v1785_v13, %v1935_v35 }
 0x132   : > { %v566_v27 = vmax.f32 %v550_v6, 0.0  ;;  %v1955_v11 = vmul.f32 0.00390625, %v385_v22  ;;  %v622_v30 = vadd.f32 1e-12, %v574_v62  ;;  %870 = vmatmul.mubr.f32.gmra.mrb[2].mxu1 %v661_v7  ;;  %v543_v34 = vmul.f32 %v1953_v21, %v1953_v21 }
 0x133   : > { %821 = vmatprep.mubr.f32.mxu0 %v646_v25  ;;  %v489_v15 = vpop.xlane.xlu1 %488  ;;  %v585_v25 = vsub.f32 %v1783_v10, %v1935_v35 }
 0x134   : > { %v614_v31 = vadd.f32 1e-12, %v566_v27  ;;  %822 = vmatmul.mubr.f32.gmra.mrb[2].mxu0 %v645_v26  ;;  %1267 = vrsqrt.f32 %v622_v30  ;;  %v527_v36 = vmul.f32 0.00390625, %v489_v15  ;;  %v535_v12 = vmul.f32 %v1955_v11, %v1955_v11 }
 0x135   : > { %v465_v39 = vpop.xlane.xlu0 %464 }
 0x136   : > { %1269 = vrsqrt.f32 %v614_v31  ;;  %v519_v46 = vmul.f32 0.00390625, %v465_v39  ;;  %v1264_v41 = vpop.eup %1263  ;;  %v559_v44 = vsub.f32 %v527_v36, %v543_v34 }
 0x137   : > { %v412_v55 = vpop.xlane.xlu1 %411  ;;  %v664_v56 = vmul.f32 %v1264_v41, %v600_v40  ;;  %v663_v17 = vmul.f32 %v1264_v41, %v599_v29 }
 0x138   : > { %v1266_v49 = vpop.eup %1265  ;;  %v551_v54 = vsub.f32 %v519_v46, %v535_v12  ;;  %v575_v18 = vmax.f32 %v559_v44, 0.0  ;;  %v1969_v48 = vmul.f32 0.00390625, %v412_v55  ;;  %v603_v46 = vsub.f32 %v1807_v52, %v1953_v21 }
 0x139   : > { %v388_v42 = vpop.xlane.xlu0 %387  ;;  %v648_v59 = vmul.f32 %v1266_v49, %v584_v47  ;;  %v647_v60 = vmul.f32 %v1266_v49, %v583_v43  ;;  %875 = vmatprep.mubr.f32.mxu1 %v664_v56  ;;  %v604_v44 = vsub.f32 %v1809_v53, %v1953_v21  ;;  %v587_v56 = vsub.f32 %v1811_v57, %v1955_v11 }
 0x13a   : > { %v567_v4 = vmax.f32 %v551_v54, 0.0  ;;  %v1971_v61 = vmul.f32 0.00390625, %v388_v42  ;;  %v623_v50 = vadd.f32 1e-12, %v575_v18  ;;  %876 = vmatmul.mubr.f32.gmra.mrb[4].mxu1 %v663_v17  ;;  %v544_v5 = vmul.f32 %v1969_v48, %v1969_v48 }
 0x13b   : > { %827 = vmatprep.mubr.f32.mxu0 %v648_v59  ;;  %v492_v45 = vpop.xlane.xlu1 %491  ;;  %v588_v52 = vsub.f32 %v1813_v58, %v1955_v11  ;;  %v605_v11 = vsub.f32 %v1835_v32, %v1969_v48 }
 0x13c   : > { %v615_v51 = vadd.f32 1e-12, %v567_v4  ;;  %828 = vmatmul.mubr.f32.gmra.mrb[4].mxu0 %v647_v60  ;;  %1271 = vrsqrt.f32 %v623_v50  ;;  %v528_v6 = vmul.f32 0.00390625, %v492_v45  ;;  %v536_v7 = vmul.f32 %v1971_v61, %v1971_v61 }
 0x13d   : > { %v468_v8 = vpop.xlane.xlu0 %467 }
 0x13e   : > { %1273 = vrsqrt.f32 %v615_v51  ;;  %v520_v62 = vmul.f32 0.00390625, %v468_v8  ;;  %v1268_v22 = vpop.eup %1267  ;;  %v560_v26 = vsub.f32 %v528_v6, %v544_v5 }
 0x13f   : > { %v415_v31 = vpop.xlane.xlu1 %414  ;;  %v666_v15 = vmul.f32 %v1268_v22, %v602_v20  ;;  %v665_v29 = vmul.f32 %v1268_v22, %v601_v63 }
 0x140   : > { %v1270_v27 = vpop.eup %1269  ;;  %v552_v30 = vsub.f32 %v520_v62, %v536_v7  ;;  %v576_v34 = vmax.f32 %v560_v26, 0.0  ;;  %v1985_v3 = vmul.f32 0.00390625, %v415_v31  ;;  %v606_v62 = vsub.f32 %v1837_v33, %v1969_v48 }
 0x141   : > { %v391_v28 = vpop.xlane.xlu0 %390  ;;  %v650_v36 = vmul.f32 %v1270_v27, %v586_v2  ;;  %v649_v39 = vmul.f32 %v1270_v27, %v585_v25  ;;  %881 = vmatprep.mubr.f32.mxu1 %v666_v15  ;;  %v589_v26 = vsub.f32 %v1839_v37, %v1971_v61  ;;  %v590_v27 = vsub.f32 %v1841_v38, %v1971_v61 }
 0x142   : > { %v568_v40 = vmax.f32 %v552_v30, 0.0  ;;  %v1987_v12 = vmul.f32 0.00390625, %v391_v28  ;;  %v624_v10 = vadd.f32 1e-12, %v576_v34  ;;  %882 = vmatmul.mubr.f32.gmra.mrb[6].mxu1 %v665_v29  ;;  %v545_v41 = vmul.f32 %v1985_v3, %v1985_v3 }
 0x143   : > { %833 = vmatprep.mubr.f32.mxu0 %v650_v36  ;;  %v495_v35 = vpop.xlane.xlu1 %494  ;;  %v607_v37 = vsub.f32 %v1863_v16, %v1985_v3  ;;  %v608_v38 = vsub.f32 %v1865_v19, %v1985_v3 }
 0x144   : > { %v616_v13 = vadd.f32 1e-12, %v568_v40  ;;  %834 = vmatmul.mubr.f32.gmra.mrb[6].mxu0 %v649_v39  ;;  %1275 = vrsqrt.f32 %v624_v10  ;;  %v529_v43 = vmul.f32 0.00390625, %v495_v35  ;;  %v537_v49 = vmul.f32 %v1987_v12, %v1987_v12 }
 0x145   : > { %v471_v47 = vpop.xlane.xlu0 %470  ;;  %v591_v40 = vsub.f32 %v1867_v23, %v1987_v12  ;;  %v592_v10 = vsub.f32 %v1869_v24, %v1987_v12 }
 0x146   : > { %1277 = vrsqrt.f32 %v616_v13  ;;  %v521_v54 = vmul.f32 0.00390625, %v471_v47  ;;  %v1272_v55 = vpop.eup %1271  ;;  %v561_v17 = vsub.f32 %v529_v43, %v545_v41 }
 0x147   : > { %v418_v59 = vpop.xlane.xlu1 %417  ;;  %v668_v60 = vmul.f32 %v1272_v55, %v604_v44  ;;  %v667_v4 = vmul.f32 %v1272_v55, %v603_v46  ;;  %v741_v55 = vlaneseq }
 0x148   : > { %v1274_v18 = vpop.eup %1273  ;;  %v553_v42 = vsub.f32 %v521_v54, %v537_v49  ;;  %v577_v50 = vmax.f32 %v561_v17, 0.0  ;;  %v2001_v53 = vmul.f32 0.00390625, %v418_v59 }
 0x149   : > { %v394_v21 = vpop.xlane.xlu0 %393  ;;  %v652_v51 = vmul.f32 %v1274_v18, %v588_v52  ;;  %v651_v45 = vmul.f32 %v1274_v18, %v587_v56  ;;  %887 = vmatprep.mubr.f32.mxu1 %v668_v60 }
 0x14a   : > { %v569_v63 = vmax.f32 %v553_v42, 0.0  ;;  %v506_v5 = vmul.f32 0.00390625, %v394_v21  ;;  %v625_v6 = vadd.f32 1e-12, %v577_v50  ;;  %888 = vmatmul.mubr.f32.gmra.mrb[8].mxu1 %v667_v4  ;;  %v546_v8 = vmul.f32 %v2001_v53, %v2001_v53 }
 0x14b   : > { %839 = vmatprep.mubr.f32.mxu0 %v652_v51  ;;  %v498_v58 = vpop.xlane.xlu1 %497  ;;  %v609_v16 = vsub.f32 %v1891_v0, %v2001_v53  ;;  %v610_v19 = vsub.f32 %v1893_v1, %v2001_v53  ;;  %v742_v0 = vshrl.u32 %v741_v55, 7  ;;  %v739_v1 = vld [vmem:[%s2154_s3] sm:$0x3] }
 0x14c   : > { %v617_v57 = vadd.f32 1e-12, %v569_v63  ;;  %840 = vmatmul.mubr.f32.gmra.mrb[8].mxu0 %v651_v45  ;;  %1279 = vrsqrt.f32 %v625_v6  ;;  %v530_v20 = vmul.f32 0.00390625, %v498_v58  ;;  %v538_v22 = vmul.f32 %v506_v5, %v506_v5 }
 0x14d   : > { %v474_v7 = vpop.xlane.xlu0 %473  ;;  %v593_v23 = vsub.f32 %v1895_v9, %v506_v5  ;;  %v594_v24 = vsub.f32 %v1897_v14, %v506_v5  ;;  %v743_v56 = vsub.s32 0, %v742_v0  ;;  %v747_v9 = vsub.s32 1, %v742_v0 }
 0x14e   : > { %1281 = vrsqrt.f32 %v617_v57  ;;  %v522_v25 = vmul.f32 0.00390625, %v474_v7  ;;  %v1276_v2 = vpop.eup %1275  ;;  %v562_v32 = vsub.f32 %v530_v20, %v546_v8 }
 0x14f   : > { %v670_v15 = vmul.f32 %v1276_v2, %v606_v62  ;;  %v669_v29 = vmul.f32 %v1276_v2, %v605_v11  ;;  %v2030_v52 = vrot.slane %v739_v1, %v743_v56  ;;  %v2032_v14 = vrot.slane %v739_v1, %v747_v9 }
 0x150   : > { %v1278_v30 = vpop.eup %1277  ;;  %v554_v31 = vsub.f32 %v522_v25, %v538_v22  ;;  %v578_v34 = vmax.f32 %v562_v32, 0.0 }
 0x151   : > { %v654_v28 = vmul.f32 %v1278_v30, %v590_v27  ;;  %v653_v36 = vmul.f32 %v1278_v30, %v589_v26  ;;  %893 = vmatprep.mubr.f32.mxu1 %v670_v15 }
 0x152   : > { %v570_v39 = vmax.f32 %v554_v31, 0.0  ;;  %v626_v33 = vadd.f32 1e-12, %v578_v34  ;;  %894 = vmatmul.mubr.f32.gmra.mrb[10].mxu1 %v669_v29 }
 0x153   : > { %845 = vmatprep.mubr.f32.mxu0 %v654_v28 }
 0x154   : > { %v618_v48 = vadd.f32 1e-12, %v570_v39  ;;  %846 = vmatmul.mubr.f32.gmra.mrb[10].mxu0 %v653_v36  ;;  %1283 = vrsqrt.f32 %v626_v33 }
 0x156   : > { %1285 = vrsqrt.f32 %v618_v48  ;;  %v1280_v61 = vpop.eup %1279 }
 0x157   : > { %v672_v35 = vmul.f32 %v1280_v61, %v608_v38  ;;  %v671_v46 = vmul.f32 %v1280_v61, %v607_v37 }
 0x158   : > { %v1282_v13 = vpop.eup %1281 }
 0x159   : > { %v656_v41 = vmul.f32 %v1282_v13, %v592_v10  ;;  %v655_v43 = vmul.f32 %v1282_v13, %v591_v40  ;;  %899 = vmatprep.mubr.f32.mxu1 %v672_v35 }
 0x15a   : > { %900 = vmatmul.mubr.f32.gmra.mrb[12].mxu1 %v671_v46 }
 0x15b   : > { %851 = vmatprep.mubr.f32.mxu0 %v656_v41 }
 0x15c   : > { %852 = vmatmul.mubr.f32.gmra.mrb[12].mxu0 %v655_v43 }
 0x15e   : > { %v1284_v3 = vpop.eup %1283 }
 0x15f   : > { %v674_v47 = vmul.f32 %v1284_v3, %v610_v19  ;;  %v673_v44 = vmul.f32 %v1284_v3, %v609_v16 }
 0x160   : > { %v1286_v12 = vpop.eup %1285 }
 0x161   : > { %v658_v49 = vmul.f32 %v1286_v12, %v594_v24  ;;  %v657_v54 = vmul.f32 %v1286_v12, %v593_v23  ;;  %905 = vmatprep.mubr.f32.mxu1 %v674_v47 }
 0x162   : > { %906 = vmatmul.mubr.f32.gmra.mrb[14].mxu1 %v673_v44 }
 0x163   : > { %857 = vmatprep.mubr.f32.mxu0 %v658_v49 }
 0x164   : > { %858 = vmatmul.mubr.f32.gmra.mrb[14].mxu0 %v657_v54 }
 0x1fd   : > { %v817_v17 = vpop.f32.mrb[0].mxu0 }
 0x1fe   : > { %v818_v18 = vadd.f32 %v817_v17, %v2030_v52  ;;  %v819_v42 = vpop.f32.mrb[1].mxu0 }
 0x1ff   : > { %v820_v59 = vadd.f32 %v819_v42, %v2032_v14 }
 0x200   : > { %912 = vst [vmem:[%s2037_s7] sm:$0xff] %v818_v18 }
 0x201   : > { %913 = vst [vmem:[%s2037_s7 + $0x8] sm:$0xff] %v820_v59  ;;  %v865_v60 = vpop.f32.mrb[0].mxu1 }
 0x202   : > { %v866_v4 = vadd.f32 %v865_v60, %v2030_v52  ;;  %v867_v50 = vpop.f32.mrb[1].mxu1 }
 0x203   : > { %v868_v53 = vadd.f32 %v867_v50, %v2032_v14 }
 0x204   : > { %928 = vst [vmem:[%s2037_s7 + $0x80] sm:$0xff] %v866_v4 }
 0x205   : > { %929 = vst [vmem:[%s2037_s7 + $0x88] sm:$0xff] %v868_v53  ;;  %v871_v51 = vpop.f32.mrb[2].mxu1 }
 0x206   : > { %v872_v63 = vadd.f32 %v871_v51, %v2030_v52  ;;  %v873_v6 = vpop.f32.mrb[3].mxu1 }
 0x207   : > { %v823_v21 = vpop.f32.mrb[2].mxu0  ;;  %v874_v58 = vadd.f32 %v873_v6, %v2032_v14 }
 0x208   : > { %v824_v45 = vadd.f32 %v823_v21, %v2030_v52  ;;  %v825_v5 = vpop.f32.mrb[3].mxu0  ;;  %930 = vst [vmem:[%s2037_s7 + $0x90] sm:$0xff] %v872_v63 }
 0x209   : > { %v826_v57 = vadd.f32 %v825_v5, %v2032_v14  ;;  %931 = vst [vmem:[%s2037_s7 + $0x98] sm:$0xff] %v874_v58 }
 0x20a   : > { %914 = vst [vmem:[%s2037_s7 + $0x10] sm:$0xff] %v824_v45 }
 0x20b   : > { %915 = vst [vmem:[%s2037_s7 + $0x18] sm:$0xff] %v826_v57 }
 0x20d   : > { %v877_v11 = vpop.f32.mrb[4].mxu1 }
 0x20e   : > { %v878_v20 = vadd.f32 %v877_v11, %v2030_v52  ;;  %v879_v7 = vpop.f32.mrb[5].mxu1 }
 0x20f   : > { %v829_v8 = vpop.f32.mrb[4].mxu0  ;;  %v880_v25 = vadd.f32 %v879_v7, %v2032_v14 }
 0x210   : > { %v830_v62 = vadd.f32 %v829_v8, %v2030_v52  ;;  %v831_v22 = vpop.f32.mrb[5].mxu0  ;;  %932 = vst [vmem:[%s2037_s7 + $0xa0] sm:$0xff] %v878_v20 }
 0x211   : > { %v832_v2 = vadd.f32 %v831_v22, %v2032_v14  ;;  %933 = vst [vmem:[%s2037_s7 + $0xa8] sm:$0xff] %v880_v25 }
 0x212   : > { %916 = vst [vmem:[%s2037_s7 + $0x20] sm:$0xff] %v830_v62 }
 0x213   : > { %917 = vst [vmem:[%s2037_s7 + $0x28] sm:$0xff] %v832_v2 }
 0x215   : > { %v883_v26 = vpop.f32.mrb[6].mxu1 }
 0x216   : > { %v884_v32 = vadd.f32 %v883_v26, %v2030_v52  ;;  %v885_v30 = vpop.f32.mrb[7].mxu1 }
 0x217   : > { %v835_v27 = vpop.f32.mrb[6].mxu0  ;;  %v886_v29 = vadd.f32 %v885_v30, %v2032_v14 }
 0x218   : > { %v836_v31 = vadd.f32 %v835_v27, %v2030_v52  ;;  %v837_v15 = vpop.f32.mrb[7].mxu0  ;;  %934 = vst [vmem:[%s2037_s7 + $0xb0] sm:$0xff] %v884_v32 }
 0x219   : > { %v838_v34 = vadd.f32 %v837_v15, %v2032_v14  ;;  %935 = vst [vmem:[%s2037_s7 + $0xb8] sm:$0xff] %v886_v29 }
 0x21a   : > { %918 = vst [vmem:[%s2037_s7 + $0x30] sm:$0xff] %v836_v31 }
 0x21b   : > { %919 = vst [vmem:[%s2037_s7 + $0x38] sm:$0xff] %v838_v34 }
 0x21d   : > { %v889_v28 = vpop.f32.mrb[8].mxu1 }
 0x21e   : > { %v890_v39 = vadd.f32 %v889_v28, %v2030_v52  ;;  %v891_v33 = vpop.f32.mrb[9].mxu1 }
 0x21f   : > { %v841_v36 = vpop.f32.mrb[8].mxu0  ;;  %v892_v38 = vadd.f32 %v891_v33, %v2032_v14 }
 0x220   : > { %v842_v48 = vadd.f32 %v841_v36, %v2030_v52  ;;  %v843_v37 = vpop.f32.mrb[9].mxu0  ;;  %936 = vst [vmem:[%s2037_s7 + $0xc0] sm:$0xff] %v890_v39 }
 0x221   : > { %v844_v61 = vadd.f32 %v843_v37, %v2032_v14  ;;  %937 = vst [vmem:[%s2037_s7 + $0xc8] sm:$0xff] %v892_v38 }
 0x222   : > { %920 = vst [vmem:[%s2037_s7 + $0x40] sm:$0xff] %v842_v48 }
 0x223   : > { %921 = vst [vmem:[%s2037_s7 + $0x48] sm:$0xff] %v844_v61 }
 0x225   : > { %v895_v40 = vpop.f32.mrb[10].mxu1 }
 0x226   : > { %v896_v13 = vadd.f32 %v895_v40, %v2030_v52  ;;  %v897_v35 = vpop.f32.mrb[11].mxu1 }
 0x227   : > { %v847_v10 = vpop.f32.mrb[10].mxu0  ;;  %v898_v43 = vadd.f32 %v897_v35, %v2032_v14 }
 0x228   : > { %v848_v46 = vadd.f32 %v847_v10, %v2030_v52  ;;  %v849_v41 = vpop.f32.mrb[11].mxu0  ;;  %938 = vst [vmem:[%s2037_s7 + $0xd0] sm:$0xff] %v896_v13 }
 0x229   : > { %v850_v16 = vadd.f32 %v849_v41, %v2032_v14  ;;  %939 = vst [vmem:[%s2037_s7 + $0xd8] sm:$0xff] %v898_v43 }
 0x22a   : > { %922 = vst [vmem:[%s2037_s7 + $0x50] sm:$0xff] %v848_v46 }
 0x22b   : > { %923 = vst [vmem:[%s2037_s7 + $0x58] sm:$0xff] %v850_v16 }
 0x22d   : > { %v901_v19 = vpop.f32.mrb[12].mxu1 }
 0x22e   : > { %v902_v23 = vadd.f32 %v901_v19, %v2030_v52  ;;  %v903_v24 = vpop.f32.mrb[13].mxu1 }
 0x22f   : > { %v853_v3 = vpop.f32.mrb[12].mxu0  ;;  %v904_v44 = vadd.f32 %v903_v24, %v2032_v14 }
 0x230   : > { %v854_v12 = vadd.f32 %v853_v3, %v2030_v52  ;;  %v855_v47 = vpop.f32.mrb[13].mxu0  ;;  %940 = vst [vmem:[%s2037_s7 + $0xe0] sm:$0xff] %v902_v23 }
 0x231   : > { %v856_v49 = vadd.f32 %v855_v47, %v2032_v14  ;;  %941 = vst [vmem:[%s2037_s7 + $0xe8] sm:$0xff] %v904_v44 }
 0x232   : > { %924 = vst [vmem:[%s2037_s7 + $0x60] sm:$0xff] %v854_v12 }
 0x233   : > { %925 = vst [vmem:[%s2037_s7 + $0x68] sm:$0xff] %v856_v49 }
 0x235   : > { %v907_v54 = vpop.f32.mrb[14].mxu1 }
 0x236   : > { %v908_v0 = vadd.f32 %v907_v54, %v2030_v52  ;;  %v909_v56 = vpop.f32.mrb[15].mxu1 }
 0x237   : > { %v859_v55 = vpop.f32.mrb[14].mxu0  ;;  %v910_v17 = vadd.f32 %v909_v56, %v2032_v14 }
 0x238   : > { %v860_v1 = vadd.f32 %v859_v55, %v2030_v52  ;;  %v861_v9 = vpop.f32.mrb[15].mxu0  ;;  %942 = vst [vmem:[%s2037_s7 + $0xf0] sm:$0xff] %v908_v0 }
 0x239   : > { %v862_v18 = vadd.f32 %v861_v9, %v2032_v14  ;;  %943 = vst [vmem:[%s2037_s7 + $0xf8] sm:$0xff] %v910_v17 }
 0x23a   : > { %926 = vst [vmem:[%s2037_s7 + $0x70] sm:$0xff] %v860_v1 }
 0x23b   : > { %927 = vst [vmem:[%s2037_s7 + $0x78] sm:$0xff] %v862_v18 }
 0x23c   : > { %1388 = shalt.err (!%p1385_p6)
}
 0x23d   : > { %s1389_s0 = scalar_lea.hbm %s2101_s10, 4096  ;;  %s1393_s11 = scalar_lea.hbm %s2155_s4, 12288 }
 0x23e   : > { %p1390_p8 = scmp.ne.s32.totalorder %s2101_s10, %s1389_s0  ;;  %p1394_p4 = scmp.lt.u32.totalorder %s2101_s10, %s2155_s4 }
 0x23f   : > { %p1395_p10 = scmp.lt.u32.totalorder %s1393_s11, %s1389_s0  ;;  %p1397_p3 = scmp.lt.u32.totalorder %s1389_s0, %s2101_s10 }
 0x240   : > { %p1391_p11 = pnand %p1390_p8, %p1570_p12 }
 0x241   : > { %p1396_p13 = por %p1395_p10, %p1394_p4 }
 0x242   : > { %p1392_p0 = pneg %p1391_p11 }
 0x243   : > { %p1398_p7 = por %p1397_p3, %p1396_p13 }
 0x245   : > { %p1399_p9 = pnand %p1398_p7, %p1392_p0 }
 0x247   : > { %1402 = shalt.err (!%p1399_p9)
}
 0x248   : > { %s1457_s12 = smov 256   ;;  %s1458_s21 = smov 16  }
 0x249   : > { %1197 = dma.vmem_to_hbm [thread:$0]  (%p1570_p12), %s2103_s28, 4096, %s2101_s10, %s945_s19, %s1457_s12, %s1457_s12, %s1458_s21  }
 0x24a PF: > { %p1217_p1 = scmp.ge.s32.totalorder %s1449_s18, 2  ;;  %s974_s13 = sand.u32 1, %s1437_s15  }
 0x24b   : > { %p2181_p5 = scmp.ne.s32.totalorder %s2166_s22, 0  ;;  %s975_s7 = scalar_lea.sflag [#allocation4], %s974_s13 }
 0x24d   : > { %p1211_p2 = pnand %p1217_p1, %p2181_p5 }
 0x24f   : > { %1432 = dma.done.wait (!%p1211_p2), %s975_s7, 4096  }
 0x250   : > { %1434 = vsyncadd (!%p1211_p2), %s975_s7, 4294963200  ;;  %s2182_s8 = sld [smem:[#allocation13_spill]]  ;;  %p20_p6 = scmp.ge.s32.totalorder %s1537_s27, 5  }
 0x251   : > { %s2183_s15 = smov %s1441_s16  ;;  %s2184_s16 = smov %s1445_s17 }
 0x252   : > { %s2186_s18 = smov %s1537_s27  ;;  %22 = sbr.rel (!%p20_p6) target bundleno = 10 (0xa), region = 98 }
 0x256   : > { %s2185_s17 = smov %s2182_s8 }
 0x259   :  { %980 = vsyncpa [#allocation3], 1 }
 0x25a   :  { %982 = vsyncpa [#allocation3 + $0x1], 1 }
 0x25b   :  { %983 = vsyncpa [#allocation6], 1 }
 0x25c   :  { %985 = vsyncpa [#allocation6 + $0x1], 1 }
 0x25d   :  { %986 = vsyncpa [#allocation4], 1 }
 0x25e   :  { %988 = vsyncpa [#allocation4 + $0x1], 1 }

</bundles_post_ra>
